<compile_context>
chip_gen: v7x
topology: tpu7x:2x2x1
jax: 0.10.0
libtpu: 0.0.40
codegen_flags: <defaults>
</compile_context>

<pallas_src>
import jax
import jax.numpy as jnp
from jax.experimental import pallas as pl
from jax.experimental.pallas import tpu as pltpu

LANE = 128
MAX_TB = 32 * 1024              # max lanes per batch tile (review: 8K-32K)
VMEM_TILE_BUDGET = 16 << 20     # per-step double-buffered working-set budget


def _attention_kernel(deg_ref, c_ref, d_ref, out_ref):
    """One batch tile.

    deg_ref: (1, TB)  degree values, batch on the lane axis (lane-dense).
    c_ref:   (E, 1)   collapsed weight  (fc2.W @ fc1.W).
    d_ref:   (E, 1)   collapsed bias    (fc2.W @ fc1.b + fc2.b).
    out_ref: (E, TB)  softmax probabilities, transposed (experts on sublanes).
    """
    deg = deg_ref[...]                                 # (1, TB)
    # Collapsed affine: broadcast-FMA on the VPU (no MXU, no A dimension).
    logits = c_ref[...] * deg + d_ref[...]             # (E, TB)
    # Numerically-stable softmax over the experts axis (sublanes).
    m = jnp.max(logits, axis=0, keepdims=True)         # (1, TB)  XLU
    e = jnp.exp(logits - m)                            # EUP
    denom = jnp.sum(e, axis=0, keepdims=True)          # (1, TB)  XLU
    # Exact division: kernel is DMA/overhead bound, approx reciprocal buys
    # nothing and costs accuracy.
    out_ref[...] = (e / denom).astype(out_ref.dtype)


def _round_up(x, m):
    return ((x + m - 1) // m) * m


def _pick_tiling(b, num_experts):
    """Choose (tb, b_pad, grid) for the batch axis.

    Goals: large lane-dense tiles (up to MAX_TB), >=2 grid steps whenever
    possible (v7x megacore), minimal padding waste, VMEM-bounded tiles.
    """
    b128 = _round_up(b, LANE)

    # VMEM cap: per step we hold (1 + E) f32 rows of width tb, double-buffered.
    vmem_cap = VMEM_TILE_BUDGET // (2 * 4 * (1 + num_experts))
    vmem_cap = max(LANE, (vmem_cap // LANE) * LANE)
    tb_cap = min(MAX_TB, vmem_cap)

    if b128 <= LANE:
        # Single minimal tile; grid of 1 is unavoidable.
        return LANE, LANE, 1

    # Keep at least 2 grid steps so v7x can use both TensorCores.
    half = max(LANE, ((b128 // 2) // LANE) * LANE)
    tb_max = min(tb_cap, half)

    # Balance the tile size across the grid to minimize padding waste.
    grid = pl.cdiv(b128, tb_max)
    tb = _round_up(pl.cdiv(b128, grid), LANE)
    b_pad = grid * tb
    return tb, b_pad, grid


def attention_forward(degree, w1, b1, w2, b2, *, out_dtype=jnp.float32,
                      transposed_output=False):
    """Forward of the PyTorch Attention module.

    degree: (B, 1) float32
    w1: fc1.weight (A, 1);  b1: fc1.bias (A,)
    w2: fc2.weight (E, A);  b2: fc2.bias (E,)
    Returns softmax(fc2(fc1(degree)), dim=1):
      (B, E) if transposed_output=False (module semantics), else (E, B)
      (lane-dense gating layout; saves a full extra HBM pass for consumers
       that can contract over the experts axis directly).
    """
    B = degree.shape[0]
    E = w2.shape[0]

    # --- Algebraic collapse of the two linears (fc1 in_features == 1). ---
    c = (w2 @ w1).reshape(E, 1).astype(jnp.float32)        # (E, 1)
    d = (w2 @ b1 + b2).reshape(E, 1).astype(jnp.float32)   # (E, 1)

    # --- Tiling: large lane-dense batch tiles, padded to a tile multiple. ---
    tb, b_pad, grid_b = _pick_tiling(B, E)

    # --- Lane-dense input: batch on the last (lane) axis. ---
    deg_row = degree.reshape(1, B).astype(jnp.float32)
    if b_pad != B:
        deg_row = jnp.pad(deg_row, ((0, 0), (0, b_pad - B)))

    out_t = pl.pallas_call(
        _attention_kernel,
        out_shape=jax.ShapeDtypeStruct((E, b_pad), out_dtype),
        grid_spec=pltpu.PrefetchScalarGridSpec(
            num_scalar_prefetch=0,
            grid=(grid_b,),
            in_specs=[
                pl.BlockSpec((1, tb), lambda i: (0, i)),   # degree tile (pipelined)
                pl.BlockSpec((E, 1), lambda i: (0, 0)),    # collapsed weight (resident)
                pl.BlockSpec((E, 1), lambda i: (0, 0)),    # collapsed bias   (resident)
            ],
            out_specs=pl.BlockSpec((E, tb), lambda i: (0, i)),
        ),
        compiler_params=pltpu.CompilerParams(
            # Batch tiles are independent: shards across TensorCores on v7x.
            dimension_semantics=("parallel",),
        ),
        cost_estimate=pl.CostEstimate(
            flops=8 * b_pad * E,
            transcendentals=b_pad * E,
            bytes_accessed=4 * (b_pad + 2 * E)
            + jnp.dtype(out_dtype).itemsize * E * b_pad,
        ),
    )(deg_row, c, d)

    if transposed_output:
        return out_t[:, :B]
    # Back to the module's (B, E) layout; drop the batch padding.
    # (For very small B an XLA-fused path would avoid the custom-call + HBM
    #  round trip entirely; kept on the Pallas path here for clarity.)
    return out_t[:, :B].T


def _ref_forward(degree, w1, b1, w2, b2):
    """Pure-JAX reference of the original (un-collapsed) module."""
    h = degree @ w1.T + b1
    logits = h @ w2.T + b2
    return jax.nn.softmax(logits, axis=1)


if __name__ == "__main__":
    attention_dim = 32
    num_experts = 4

    key = jax.random.PRNGKey(0)
    k_deg, k_w1, k_b1, k_w2, k_b2, k_deg2 = jax.random.split(key, 6)

    # PyTorch parameter shapes: fc1.weight (A, 1), fc1.bias (A,),
    #                           fc2.weight (E, A), fc2.bias (E,).
    w1 = jax.random.normal(k_w1, (attention_dim, 1), dtype=jnp.float32) * 0.5
    b1 = jax.random.normal(k_b1, (attention_dim,), dtype=jnp.float32) * 0.1
    w2 = jax.random.normal(k_w2, (num_experts, attention_dim), dtype=jnp.float32) * 0.2
    b2 = jax.random.normal(k_b2, (num_experts,), dtype=jnp.float32) * 0.1

    fwd = jax.jit(attention_forward)

    # Small batch (grid of 1, minimal tile).
    batch = 8
    degree = jax.random.normal(k_deg, (batch, 1), dtype=jnp.float32)
    out = jax.block_until_ready(fwd(degree, w1, b1, w2, b2))
    ref = _ref_forward(degree, w1, b1, w2, b2)
    assert out.shape == (batch, num_experts)
    assert jnp.allclose(out, ref, atol=1e-5, rtol=1e-5)
    assert jnp.allclose(jnp.sum(out, axis=1), jnp.ones((batch,)), atol=1e-5)

    # Slightly larger, non-multiple-of-128 batch: exercises padding and the
    # multi-tile ("parallel" grid >= 2) path.
    batch2 = 300
    degree2 = jax.random.normal(k_deg2, (batch2, 1), dtype=jnp.float32)
    out2 = jax.block_until_ready(fwd(degree2, w1, b1, w2, b2))
    ref2 = _ref_forward(degree2, w1, b1, w2, b2)
    assert out2.shape == (batch2, num_experts)
    assert jnp.allclose(out2, ref2, atol=1e-5, rtol=1e-5)
    assert jnp.allclose(jnp.sum(out2, axis=1), jnp.ones((batch2,)), atol=1e-5)

    print("KERNEL_OK")
</pallas_src>

<mosaic_0001>
module attributes {stable_mosaic.version = 11 : i64} {
  func.func @_attention_kernel(%arg0: i32, %arg1: memref<1x128xf32, #tpu.memory_space<vmem>>, %arg2: memref<4x1xf32, #tpu.memory_space<vmem>>, %arg3: memref<4x1xf32, #tpu.memory_space<vmem>>, %arg4: memref<4x128xf32, #tpu.memory_space<vmem>>) attributes {dimension_semantics = [#tpu.dimension_semantics<parallel>], iteration_bounds = array<i64: 1>, scalar_prefetch = 0 : i64, scratch_operands = 0 : i64, tpu.core_type = #tpu.core_type<tc>, window_params = [{transform_indices = @transform_0, window_bounds = array<i64: 1, 128>}, {pipeline_mode = #tpu.pipeline_mode<synchronous>, transform_indices = @transform_1, window_bounds = array<i64: 4, 1>}, {pipeline_mode = #tpu.pipeline_mode<synchronous>, transform_indices = @transform_2, window_bounds = array<i64: 4, 1>}, {transform_indices = @transform_3, window_bounds = array<i64: 4, 128>}]} {
    %c0 = arith.constant 0 : index
    %c0_0 = arith.constant 0 : index
    %0 = vector.load %arg1[%c0, %c0_0] : memref<1x128xf32, #tpu.memory_space<vmem>>, vector<1x128xf32>
    %c0_1 = arith.constant 0 : index
    %c0_2 = arith.constant 0 : index
    %1 = vector.load %arg2[%c0_1, %c0_2] : memref<4x1xf32, #tpu.memory_space<vmem>>, vector<4x1xf32>
    %2 = vector.broadcast %1 : vector<4x1xf32> to vector<4x128xf32>
    %3 = vector.broadcast %0 : vector<1x128xf32> to vector<4x128xf32>
    %4 = arith.mulf %2, %3 : vector<4x128xf32>
    %c0_3 = arith.constant 0 : index
    %c0_4 = arith.constant 0 : index
    %5 = vector.load %arg3[%c0_3, %c0_4] : memref<4x1xf32, #tpu.memory_space<vmem>>, vector<4x1xf32>
    %6 = vector.broadcast %5 : vector<4x1xf32> to vector<4x128xf32>
    %7 = arith.addf %4, %6 : vector<4x128xf32>
    %cst = arith.constant dense<0xFF800000> : vector<128xf32>
    %8 = vector.multi_reduction <maximumf>, %7, %cst [0] : vector<4x128xf32> to vector<128xf32>
    %9 = vector.shape_cast %8 : vector<128xf32> to vector<1x128xf32>
    %10 = vector.broadcast %9 : vector<1x128xf32> to vector<4x128xf32>
    %11 = arith.subf %7, %10 : vector<4x128xf32>
    %12 = math.exp %11 : vector<4x128xf32>
    %cst_5 = arith.constant dense<0.000000e+00> : vector<128xf32>
    %13 = vector.multi_reduction <add>, %12, %cst_5 [0] : vector<4x128xf32> to vector<128xf32>
    %14 = vector.shape_cast %13 : vector<128xf32> to vector<1x128xf32>
    %15 = vector.broadcast %14 : vector<1x128xf32> to vector<4x128xf32>
    %16 = arith.divf %12, %15 : vector<4x128xf32>
    %c0_6 = arith.constant 0 : index
    %c0_7 = arith.constant 0 : index
    %17 = vector.load %arg4[%c0_6, %c0_7] : memref<4x128xf32, #tpu.memory_space<vmem>>, vector<4x128xf32>
    tpu.vector_store %arg4[%c0_6, %c0_7], %16 {strides = array<i32>} : memref<4x128xf32, #tpu.memory_space<vmem>>, vector<4x128xf32>,
    return
  }
  func.func @transform_0(%arg0: i32) -> (i32, i32) {
    %c0_i32 = arith.constant 0 : i32
    %c0_i32_0 = arith.constant 0 : i32
    return %c0_i32, %arg0 : i32, i32
  }
  func.func @transform_1(%arg0: i32) -> (i32, i32) {
    %c0_i32 = arith.constant 0 : i32
    %c0_i32_0 = arith.constant 0 : i32
    %c0_i32_1 = arith.constant 0 : i32
    return %c0_i32, %c0_i32_0 : i32, i32
  }
  func.func @transform_2(%arg0: i32) -> (i32, i32) {
    %c0_i32 = arith.constant 0 : i32
    %c0_i32_0 = arith.constant 0 : i32
    %c0_i32_1 = arith.constant 0 : i32
    return %c0_i32, %c0_i32_0 : i32, i32
  }
  func.func @transform_3(%arg0: i32) -> (i32, i32) {
    %c0_i32 = arith.constant 0 : i32
    %c0_i32_0 = arith.constant 0 : i32
    return %c0_i32, %arg0 : i32, i32
  }
}

</mosaic_0001>

<bundles_post_ra>
// kernel: attention_forward.1
= control target key start
LH: loop header
LB: loop body
LE: loop exit
PB: predicated region body
PF: predicated region fallthrough
CT: control target
= control target key end

     0   :  { %v67_v0 = vmov 0   ;;  %vm35_vm0 = vcmask 1043456   ;;  %s100_s1 = inlined_call_operand.vmem [shape: f32[4,1], index: 1, kind: input, shape index: {}]   ;;  %s101_s2 = inlined_call_operand.vmem [shape: f32[4,1], index: 2, kind: input, shape index: {}]   ;;  %s102_s0 = inlined_call_operand.vmem [shape: f32[1,128], index: 0, kind: input, shape index: {}]   ;;  %s103_s3 = inlined_call_operand.vmem [shape: f32[4,128], index: 3, kind: output, shape index: {}]  }
   0x1   :  { %62 = vset.pattern.permute.xlu0 %v67_v0  ;;  %v15_v1 = vld [vmem:[%s100_s1] sm:$0xf] }
   0x2   :  { %18 = vperm.xlu0 %62, %v15_v1   ;;  %v28_v2 = vld [vmem:[%s101_s2] sm:$0xf] }
   0x3   :  { %v60_v4 = vld [vmem:[%s102_s0] ss:$0 sm:$0xff] }
   0x6   :  { %31 = vperm.xlu0 %62, %v28_v2  }
  0x81   :  { %v19_v3 = vpop.permute.xlu0 %18 }
  0x82   :  { %v27_v5 = vmul.f32 %v60_v4, %v19_v3 }
  0x85   :  { %v32_v6 = vpop.permute.xlu0 %31 }
  0x86   :  { %v34_v7 = vadd.f32 %v32_v6, %v27_v5 }
  0x88   :  { %v36_v8 = vsel %vm35_vm0, %v34_v7, -inf }
  0x89   :  { %v37_v9 = vrot.slane %v36_v8, 4 }
  0x8b   :  { %v38_v10 = vmax.f32 %v36_v8, %v37_v9 }
  0x8d   :  { %v39_v11 = vrot.slane %v38_v10, 2 }
  0x8f   :  { %v40_v12 = vmax.f32 %v38_v10, %v39_v11 }
  0x91   :  { %v41_v13 = vrot.slane %v40_v12, 1 }
  0x93   :  { %v42_v14 = vmax.f32 %v40_v12, %v41_v13 }
  0x95   :  { %v43_v15 = vsub.f32 %v34_v7, %v42_v14 }
  0x97   :  { %v44_v16 = vmul.f32 1.442695, %v43_v15 }
  0x99   :  { %63 = vpow2.f32 %v44_v16 }
  0xa3   :  { %v64_v17 = vpop.eup %63 }
  0xa4   :  { %v46_v18 = vsel %vm35_vm0, %v64_v17, 0.0 }
  0xa5   :  { %v47_v19 = vrot.slane %v46_v18, 4 }
  0xa7   :  { %v48_v20 = vadd.f32 %v47_v19, %v46_v18 }
  0xa9   :  { %v49_v21 = vrot.slane %v48_v20, 2 }
  0xab   :  { %v50_v22 = vadd.f32 %v49_v21, %v48_v20 }
  0xad   :  { %v51_v23 = vrot.slane %v50_v22, 1 }
  0xaf   :  { %v52_v24 = vadd.f32 %v51_v23, %v50_v22 }
  0xb1   :  { %65 = vrcp.f32 %v52_v24 }
  0xbb   :  { %v66_v25 = vpop.eup %65 }
  0xbc   :  { %v54_v26 = vmul.f32 %v66_v25, %v64_v17 }
  0xbe   :  { %55 = vst [vmem:[%s103_s3] sm:$0xf] %v54_v26 }

</bundles_post_ra>
